<compile_context>
chip_gen: v7x
topology: tpu7x:2x2x1
jax: 0.10.0
libtpu: 0.0.40
codegen_flags: <defaults>
</compile_context>

<pallas_src>
import math

import jax
import jax.numpy as jnp
from jax.experimental import pallas as pl
from jax.experimental.pallas import tpu as pltpu


HIDDEN = 200        # logical hidden size (matches the PyTorch module)
HIDDEN_PAD = 256    # lane-aligned padded hidden size


def _round_up(n, m):
    return ((n + m - 1) // m) * m


def dragonnet_kernel(x_ref,
                     w1_ref, b1_ref,
                     w2_ref, b2_ref,
                     whT_ref, bh_ref,
                     out_ref):
    # Shared trunk: Linear -> ReLU -> Linear -> ReLU.
    # bf16 MXU operands, f32 accumulation; bias/ReLU stay in f32 (VPU).
    x = x_ref[...].astype(jnp.bfloat16)
    h = jnp.dot(x, w1_ref[...], preferred_element_type=jnp.float32) + b1_ref[...]
    h = jnp.maximum(h, 0.0)
    h = jnp.dot(h.astype(jnp.bfloat16), w2_ref[...],
                preferred_element_type=jnp.float32) + b2_ref[...]
    h = jnp.maximum(h, 0.0)

    # Heads off the MXU (only 3 output columns -> a full MXU pass would be
    # ~99% wasted). f32 VPU broadcast-multiply + XLU lane reduction per head.
    wh = whT_ref[...]          # (3, H) f32
    bh = bh_ref[...]           # (1, 3) f32
    t0 = jnp.sum(h * wh[0:1, :], axis=-1, keepdims=True) + bh[0:1, 0:1]
    t1 = jnp.sum(h * wh[1:2, :], axis=-1, keepdims=True) + bh[0:1, 1:2]
    pz = jnp.sum(h * wh[2:3, :], axis=-1, keepdims=True) + bh[0:1, 2:3]
    prop = jax.nn.sigmoid(pz)  # EUP, f32

    out = jnp.concatenate([t0, t1, prop], axis=1)   # (block_b, 3)
    out_ref[...] = out.astype(out_ref.dtype)


def dragonnet_forward(x, params, *, block_b=None, return_fused=False):
    """x: (B, D) float32.  params: dict from init_params.

    Returns the fused (B, 3) array [t0, t1, prop] if return_fused=True,
    otherwise the PyTorch-style triple (t0, t1, prop), each (B, 1),
    produced by a single jnp.split of the fused output.
    """
    B, D = x.shape
    H = params["w1"].shape[1]

    if block_b is None:
        # Large blocks amortize the ~0.35 us/step pipeline overhead; round to
        # 16 rows for bf16 sublane packing of the in-kernel casts.
        block_b = max(16, min(4096, _round_up(B, 16)))
        # Keep >= 2 grid steps so the "parallel" batch axis can shard across
        # both TensorCores on v7x (harmless on single-TC v5e/v6e).
        block_b = min(block_b, max(16, _round_up(pl.cdiv(B, 2), 16)))
    grid = (pl.cdiv(B, block_b),)

    flops = 2 * B * (D * H + H * H + H * 3)
    bytes_accessed = (x.size * x.dtype.itemsize
                      + sum(int(v.size) * v.dtype.itemsize for v in params.values())
                      + B * 3 * 4)
    cost = pl.CostEstimate(flops=flops, transcendentals=B,
                           bytes_accessed=bytes_accessed)

    const = lambda i: (0, 0)   # weights/biases: same block every grid step
    # Constant-index blocks need no double buffering -> single-buffer them.
    wspec = lambda p: pl.BlockSpec(p.shape, const, pipeline_mode=pl.Buffered(1))

    out = pl.pallas_call(
        dragonnet_kernel,
        out_shape=jax.ShapeDtypeStruct((B, 3), jnp.float32),
        grid=grid,
        in_specs=[
            pl.BlockSpec((block_b, D), lambda i: (i, 0)),
            wspec(params["w1"]),
            wspec(params["b1"]),
            wspec(params["w2"]),
            wspec(params["b2"]),
            wspec(params["whT"]),
            wspec(params["bh"]),
        ],
        out_specs=pl.BlockSpec((block_b, 3), lambda i: (i, 0)),
        compiler_params=pltpu.CompilerParams(dimension_semantics=("parallel",)),
        cost_estimate=cost,
    )(x,
      params["w1"], params["b1"],
      params["w2"], params["b2"],
      params["whT"], params["bh"])

    if return_fused:
        return out
    t0, t1, prop = jnp.split(out, 3, axis=1)   # single split, no repeated slices
    return t0, t1, prop


def init_params(key, input_dim, hidden=HIDDEN, hidden_pad=HIDDEN_PAD,
                weight_dtype=jnp.bfloat16):
    """Init mirroring nn.Linear default U[-1/sqrt(fan_in), 1/sqrt(fan_in)].

    Trunk weights stored (in, out) in bf16, hidden zero-padded to `hidden_pad`
    (padded units are exactly 0 through ReLU, so the math matches the 200-wide
    network). Head weights stored transposed (3, hidden_pad) in f32 for the
    VPU/XLU head path; biases f32.
    """
    def linear(key, fan_in, fan_out):
        kw, kb = jax.random.split(key)
        bound = 1.0 / math.sqrt(fan_in)
        w = jax.random.uniform(kw, (fan_in, fan_out), jnp.float32, -bound, bound)
        b = jax.random.uniform(kb, (1, fan_out), jnp.float32, -bound, bound)
        return w, b

    k1, k2, k3, k4, k5 = jax.random.split(key, 5)
    w1, b1 = linear(k1, input_dim, hidden)
    w2, b2 = linear(k2, hidden, hidden)
    wt0, bt0 = linear(k3, hidden, 1)
    wt1, bt1 = linear(k4, hidden, 1)
    wp, bp = linear(k5, hidden, 1)

    pad = hidden_pad - hidden
    w1p = jnp.pad(w1, ((0, 0), (0, pad)))
    b1p = jnp.pad(b1, ((0, 0), (0, pad)))
    w2p = jnp.pad(w2, ((0, pad), (0, pad)))
    b2p = jnp.pad(b2, ((0, 0), (0, pad)))

    wh = jnp.concatenate([wt0, wt1, wp], axis=1)     # (hidden, 3), cols [t0,t1,prop]
    whT = jnp.pad(wh, ((0, pad), (0, 0))).T          # (3, hidden_pad), f32
    bh = jnp.concatenate([bt0, bt1, bp], axis=1)     # (1, 3), f32

    return dict(w1=w1p.astype(weight_dtype), b1=b1p,
                w2=w2p.astype(weight_dtype), b2=b2p,
                whT=jnp.asarray(whT, jnp.float32), bh=bh)


def dragonnet_reference(x, params):
    """Pure-JAX reference mirroring the kernel numerics (bf16 MXU operands in the
    trunk, f32 accumulation, f32 head projection)."""
    f32 = jnp.float32
    hp = jax.lax.Precision.HIGHEST
    w1 = params["w1"].astype(f32)
    w2 = params["w2"].astype(f32)
    whT = params["whT"]

    xq = x.astype(jnp.bfloat16).astype(f32)
    h = jnp.maximum(jnp.dot(xq, w1, precision=hp) + params["b1"], 0.0)
    hq = h.astype(jnp.bfloat16).astype(f32)
    h = jnp.maximum(jnp.dot(hq, w2, precision=hp) + params["b2"], 0.0)
    z = jnp.dot(h, whT.T, precision=hp) + params["bh"]
    return z[:, 0:1], z[:, 1:2], jax.nn.sigmoid(z[:, 2:3])


if __name__ == "__main__":
    key = jax.random.PRNGKey(0)
    k_params, k_x = jax.random.split(key)

    B, INPUT_DIM = 8, 32
    params = init_params(k_params, INPUT_DIM)
    x = jax.random.normal(k_x, (B, INPUT_DIM), jnp.float32)

    t0, t1, prop = jax.block_until_ready(dragonnet_forward(x, params))

    # Correctness check against the pure-JAX reference.
    rt0, rt1, rprop = dragonnet_reference(x, params)
    assert t0.shape == (B, 1) and t1.shape == (B, 1) and prop.shape == (B, 1)
    assert jnp.allclose(t0, rt0, atol=1e-4, rtol=1e-4)
    assert jnp.allclose(t1, rt1, atol=1e-4, rtol=1e-4)
    assert jnp.allclose(prop, rprop, atol=1e-4, rtol=1e-4)

    print("KERNEL_OK")
</pallas_src>

<mosaic_0001>
module attributes {stable_mosaic.version = 11 : i64} {
  func.func @dragonnet_kernel(%arg0: i32, %arg1: memref<16x32xf32, #tpu.memory_space<vmem>>, %arg2: memref<32x256xbf16, #tpu.memory_space<vmem>>, %arg3: memref<1x256xf32, #tpu.memory_space<vmem>>, %arg4: memref<256x256xbf16, #tpu.memory_space<vmem>>, %arg5: memref<1x256xf32, #tpu.memory_space<vmem>>, %arg6: memref<3x256xf32, #tpu.memory_space<vmem>>, %arg7: memref<1x3xf32, #tpu.memory_space<vmem>>, %arg8: memref<16x3xf32, #tpu.memory_space<vmem>>) attributes {dimension_semantics = [#tpu.dimension_semantics<parallel>], iteration_bounds = array<i64: 1>, scalar_prefetch = 0 : i64, scratch_operands = 0 : i64, tpu.core_type = #tpu.core_type<tc>, window_params = [{transform_indices = @transform_0, window_bounds = array<i64: 16, 32>}, {pipeline_mode = #tpu.pipeline_mode<synchronous>, transform_indices = @transform_1, window_bounds = array<i64: 32, 256>}, {pipeline_mode = #tpu.pipeline_mode<synchronous>, transform_indices = @transform_2, window_bounds = array<i64: 1, 256>}, {pipeline_mode = #tpu.pipeline_mode<synchronous>, transform_indices = @transform_3, window_bounds = array<i64: 256, 256>}, {pipeline_mode = #tpu.pipeline_mode<synchronous>, transform_indices = @transform_4, window_bounds = array<i64: 1, 256>}, {pipeline_mode = #tpu.pipeline_mode<synchronous>, transform_indices = @transform_5, window_bounds = array<i64: 3, 256>}, {pipeline_mode = #tpu.pipeline_mode<synchronous>, transform_indices = @transform_6, window_bounds = array<i64: 1, 3>}, {transform_indices = @transform_7, window_bounds = array<i64: 16, 3>}]} {
    %c0 = arith.constant 0 : index
    %c0_0 = arith.constant 0 : index
    %0 = vector.load %arg1[%c0, %c0_0] : memref<16x32xf32, #tpu.memory_space<vmem>>, vector<16x32xf32>
    %1 = arith.truncf %0 : vector<16x32xf32> to vector<16x32xbf16>
    %c0_1 = arith.constant 0 : index
    %c0_2 = arith.constant 0 : index
    %2 = vector.load %arg2[%c0_1, %c0_2] : memref<32x256xbf16, #tpu.memory_space<vmem>>, vector<32x256xbf16>
    %cst = arith.constant dense<0.000000e+00> : vector<16x256xf32>
    %3 = tpu.matmul %1, %2, %cst {dimension_numbers = #tpu.dot_dimension_numbers<[1], [0], [0], [1], [0, 0, 1, 1], [], []>} : vector<16x32xbf16>, vector<32x256xbf16>, vector<16x256xf32> -> vector<16x256xf32>
    %c0_3 = arith.constant 0 : index
    %c0_4 = arith.constant 0 : index
    %4 = vector.load %arg3[%c0_3, %c0_4] : memref<1x256xf32, #tpu.memory_space<vmem>>, vector<1x256xf32>
    %5 = vector.broadcast %4 : vector<1x256xf32> to vector<16x256xf32>
    %6 = arith.addf %3, %5 : vector<16x256xf32>
    %cst_5 = arith.constant 0.000000e+00 : f32
    %7 = vector.broadcast %cst_5 : f32 to vector<16x256xf32>
    %8 = arith.maximumf %6, %7 : vector<16x256xf32>
    %9 = arith.truncf %8 : vector<16x256xf32> to vector<16x256xbf16>
    %c0_6 = arith.constant 0 : index
    %c0_7 = arith.constant 0 : index
    %10 = vector.load %arg4[%c0_6, %c0_7] : memref<256x256xbf16, #tpu.memory_space<vmem>>, vector<256x256xbf16>
    %cst_8 = arith.constant dense<0.000000e+00> : vector<16x256xf32>
    %11 = tpu.matmul %9, %10, %cst_8 {dimension_numbers = #tpu.dot_dimension_numbers<[1], [0], [0], [1], [0, 0, 1, 1], [], []>} : vector<16x256xbf16>, vector<256x256xbf16>, vector<16x256xf32> -> vector<16x256xf32>
    %c0_9 = arith.constant 0 : index
    %c0_10 = arith.constant 0 : index
    %12 = vector.load %arg5[%c0_9, %c0_10] : memref<1x256xf32, #tpu.memory_space<vmem>>, vector<1x256xf32>
    %13 = vector.broadcast %12 : vector<1x256xf32> to vector<16x256xf32>
    %14 = arith.addf %11, %13 : vector<16x256xf32>
    %cst_11 = arith.constant 0.000000e+00 : f32
    %15 = vector.broadcast %cst_11 : f32 to vector<16x256xf32>
    %16 = arith.maximumf %14, %15 : vector<16x256xf32>
    %c0_12 = arith.constant 0 : index
    %c0_13 = arith.constant 0 : index
    %17 = vector.load %arg6[%c0_12, %c0_13] : memref<3x256xf32, #tpu.memory_space<vmem>>, vector<3x256xf32>
    %c0_14 = arith.constant 0 : index
    %c0_15 = arith.constant 0 : index
    %18 = vector.load %arg7[%c0_14, %c0_15] : memref<1x3xf32, #tpu.memory_space<vmem>>, vector<1x3xf32>
    %19 = vector.extract_strided_slice %17 {offsets = [0, 0], sizes = [1, 256], strides = [1, 1]} : vector<3x256xf32> to vector<1x256xf32>
    %20 = vector.broadcast %19 : vector<1x256xf32> to vector<16x256xf32>
    %21 = arith.mulf %16, %20 : vector<16x256xf32>
    %cst_16 = arith.constant dense<0.000000e+00> : vector<16xf32>
    %22 = vector.multi_reduction <add>, %21, %cst_16 [1] : vector<16x256xf32> to vector<16xf32>
    %23 = vector.shape_cast %22 : vector<16xf32> to vector<16x1xf32>
    %24 = vector.extract_strided_slice %18 {offsets = [0, 0], sizes = [1, 1], strides = [1, 1]} : vector<1x3xf32> to vector<1x1xf32>
    %25 = vector.broadcast %24 : vector<1x1xf32> to vector<16x1xf32>
    %26 = arith.addf %23, %25 : vector<16x1xf32>
    %27 = vector.extract_strided_slice %17 {offsets = [1, 0], sizes = [1, 256], strides = [1, 1]} : vector<3x256xf32> to vector<1x256xf32>
    %28 = vector.broadcast %27 : vector<1x256xf32> to vector<16x256xf32>
    %29 = arith.mulf %16, %28 : vector<16x256xf32>
    %cst_17 = arith.constant dense<0.000000e+00> : vector<16xf32>
    %30 = vector.multi_reduction <add>, %29, %cst_17 [1] : vector<16x256xf32> to vector<16xf32>
    %31 = vector.shape_cast %30 : vector<16xf32> to vector<16x1xf32>
    %32 = vector.extract_strided_slice %18 {offsets = [0, 1], sizes = [1, 1], strides = [1, 1]} : vector<1x3xf32> to vector<1x1xf32>
    %33 = vector.broadcast %32 : vector<1x1xf32> to vector<16x1xf32>
    %34 = arith.addf %31, %33 : vector<16x1xf32>
    %35 = vector.extract_strided_slice %17 {offsets = [2, 0], sizes = [1, 256], strides = [1, 1]} : vector<3x256xf32> to vector<1x256xf32>
    %36 = vector.broadcast %35 : vector<1x256xf32> to vector<16x256xf32>
    %37 = arith.mulf %16, %36 : vector<16x256xf32>
    %cst_18 = arith.constant dense<0.000000e+00> : vector<16xf32>
    %38 = vector.multi_reduction <add>, %37, %cst_18 [1] : vector<16x256xf32> to vector<16xf32>
    %39 = vector.shape_cast %38 : vector<16xf32> to vector<16x1xf32>
    %40 = vector.extract_strided_slice %18 {offsets = [0, 2], sizes = [1, 1], strides = [1, 1]} : vector<1x3xf32> to vector<1x1xf32>
    %41 = vector.broadcast %40 : vector<1x1xf32> to vector<16x1xf32>
    %42 = arith.addf %39, %41 : vector<16x1xf32>
    %43 = arith.negf %42 : vector<16x1xf32>
    %44 = math.exp %43 : vector<16x1xf32>
    %cst_19 = arith.constant 1.000000e+00 : f32
    %45 = vector.broadcast %cst_19 : f32 to vector<16x1xf32>
    %46 = arith.addf %45, %44 : vector<16x1xf32>
    %47 = arith.divf %45, %46 : vector<16x1xf32>
    %48 = tpu.concatenate %26, %34, %47 in 1 : vector<16x1xf32>, vector<16x1xf32>, vector<16x1xf32> -> vector<16x3xf32>
    %c0_20 = arith.constant 0 : index
    %c0_21 = arith.constant 0 : index
    %49 = vector.load %arg8[%c0_20, %c0_21] : memref<16x3xf32, #tpu.memory_space<vmem>>, vector<16x3xf32>
    tpu.vector_store %arg8[%c0_20, %c0_21], %48 {strides = array<i32>} : memref<16x3xf32, #tpu.memory_space<vmem>>, vector<16x3xf32>,
    return
  }
  func.func @transform_0(%arg0: i32) -> (i32, i32) {
    %c0_i32 = arith.constant 0 : i32
    %c0_i32_0 = arith.constant 0 : i32
    return %arg0, %c0_i32 : i32, i32
  }
  func.func @transform_1(%arg0: i32) -> (i32, i32) {
    %c0_i32 = arith.constant 0 : i32
    %c0_i32_0 = arith.constant 0 : i32
    %c0_i32_1 = arith.constant 0 : i32
    return %c0_i32, %c0_i32_0 : i32, i32
  }
  func.func @transform_2(%arg0: i32) -> (i32, i32) {
    %c0_i32 = arith.constant 0 : i32
    %c0_i32_0 = arith.constant 0 : i32
    %c0_i32_1 = arith.constant 0 : i32
    return %c0_i32, %c0_i32_0 : i32, i32
  }
  func.func @transform_3(%arg0: i32) -> (i32, i32) {
    %c0_i32 = arith.constant 0 : i32
    %c0_i32_0 = arith.constant 0 : i32
    %c0_i32_1 = arith.constant 0 : i32
    return %c0_i32, %c0_i32_0 : i32, i32
  }
  func.func @transform_4(%arg0: i32) -> (i32, i32) {
    %c0_i32 = arith.constant 0 : i32
    %c0_i32_0 = arith.constant 0 : i32
    %c0_i32_1 = arith.constant 0 : i32
    return %c0_i32, %c0_i32_0 : i32, i32
  }
  func.func @transform_5(%arg0: i32) -> (i32, i32) {
    %c0_i32 = arith.constant 0 : i32
    %c0_i32_0 = arith.constant 0 : i32
    %c0_i32_1 = arith.constant 0 : i32
    return %c0_i32, %c0_i32_0 : i32, i32
  }
  func.func @transform_6(%arg0: i32) -> (i32, i32) {
    %c0_i32 = arith.constant 0 : i32
    %c0_i32_0 = arith.constant 0 : i32
    %c0_i32_1 = arith.constant 0 : i32
    return %c0_i32, %c0_i32_0 : i32, i32
  }
  func.func @transform_7(%arg0: i32) -> (i32, i32) {
    %c0_i32 = arith.constant 0 : i32
    %c0_i32_0 = arith.constant 0 : i32
    return %arg0, %c0_i32 : i32, i32
  }
}

</mosaic_0001>

<bundles_post_ra>
// kernel: tpu_custom_call.1
= control target key start
LH: loop header
LB: loop body
LE: loop exit
PB: predicated region body
PF: predicated region fallthrough
CT: control target
= control target key end

     0   :  { %12 = vsyncpa [#allocation3], 0  ;;  %s865_s0 = inlined_call_operand.hbm [shape: f32[8,32], index: 0, kind: input, shape index: {}]   ;;  %s866_s1 = inlined_call_operand.hbm [shape: bf16[32,256], index: 1, kind: input, shape index: {}]   ;;  %s867_s2 = inlined_call_operand.vmem [shape: f32[1,256], index: 2, kind: input, shape index: {}]   ;;  %s868_s3 = inlined_call_operand.hbm [shape: bf16[256,256], index: 3, kind: input, shape index: {}]   ;;  %s869_s4 = inlined_call_operand.vmem [shape: f32[1,256], index: 4, kind: input, shape index: {}]   ;;  %s870_s5 = inlined_call_operand.vmem [shape: f32[3,256], index: 5, kind: input, shape index: {}]   ;;  %s871_s6 = inlined_call_operand.vmem [shape: f32[1,3], index: 6, kind: input, shape index: {}]   ;;  %s872_s7 = inlined_call_operand.vmem [shape: f32[8,3], index: 7, kind: output, shape index: {}]  }
   0x1   :  { %13 = vsyncpa [#allocation5], 0 }
   0x2   :  { %18 = vsyncadd [#allocation3], 128  ;;  %s751_s24 = smov [#allocation4]   ;;  %s752_s26 = smov [#allocation2]  }
   0x3   :  { %s31_s25 = sshll.u32 %s751_s24, 4  ;;  %s19_s27 = sshll.u32 %s752_s26, 4  ;;  %s32_s25 = int_to_ptr.vmem [resolvable:$true] %s31_s25  ;;  %s797_s27 = int_to_ptr.vmem [resolvable:$true] %s19_s27 }
   0x4   :  { %s681_s30 = scalar_lea.hbm %s866_s1, 512 }
   0x5   :  { %p682_p0 = scmp.ne.s32.totalorder %s866_s1, %s681_s30  ;;  %p685_p1 = scmp.lt.u32.totalorder %s681_s30, %s866_s1 }
   0x7   :  { %p687_p2 = pnand %p685_p1, %p682_p0 }
   0x9   :  { %690 = shalt.err (!%p687_p2)
}
   0xa   :  { %s691_s12 = scalar_lea.vmem %s32_s25, 512  ;;  %p696_p4 = scmp.lt.s32.totalorder %s32_s25, %s32_s25 }
   0xb   :  { %p692_p3 = scmp.ne.s32.totalorder %s32_s25, %s691_s12  ;;  %p697_p5 = scmp.lt.s32.totalorder %s691_s12, %s691_s12 }
   0xd   :  { %p698_p6 = por %p697_p5, %p696_p4 }
   0xf   :  { %p699_p7 = pnand %p698_p6, %p692_p3 }
  0x11   :  { %702 = shalt.err (!%p699_p7)
}
  0x12   :  { %s753_s13 = smov 128   ;;  %s754_s14 = smov 8  }
  0x13   :  { %37 = dma.hbm_to_vmem [thread:$0]  %s866_s1, 512, %s32_s25, [#allocation5], %s753_s13, %s753_s13, %s754_s14  }
  0x14   :  { %s703_s19 = scalar_lea.hbm %s865_s0, 128 }
  0x15   :  { %p704_p8 = scmp.ne.s32.totalorder %s865_s0, %s703_s19  ;;  %p707_p9 = scmp.lt.u32.totalorder %s703_s19, %s865_s0 }
  0x17   :  { %p709_p10 = pnand %p707_p9, %p704_p8 }
  0x19   :  { %712 = shalt.err (!%p709_p10)
}
  0x1a   :  { %s713_s24 = scalar_lea.vmem %s797_s27, 128  ;;  %s717_s1 = scalar_lea.vmem %s797_s27, 256 }
  0x1b   :  { %p714_p11 = scmp.ne.s32.totalorder %s797_s27, %s713_s24  ;;  %p718_p12 = scmp.lt.s32.totalorder %s797_s27, %s797_s27 }
  0x1c   :  { %p719_p13 = scmp.lt.s32.totalorder %s717_s1, %s713_s24 }
  0x1e   :  { %p720_p0 = por %p719_p13, %p718_p12 }
  0x20   :  { %p721_p1 = pnand %p720_p0, %p714_p11 }
  0x22   :  { %724 = shalt.err (!%p721_p1)
}
  0x23   :  { %25 = dma.hbm_to_vmem [thread:$0]  %s865_s0, 128, %s797_s27, [#allocation3], %s753_s13, %s753_s13, %s754_s14  }
  0x24   :  { %s755_s28 = smov [#allocation6]   ;;  %s725_s9 = scalar_lea.hbm %s868_s3, 4096 }
  0x25   :  { %s45_s29 = sshll.u32 %s755_s28, 4  ;;  %p726_p2 = scmp.ne.s32.totalorder %s868_s3, %s725_s9  ;;  %s46_s29 = int_to_ptr.vmem [resolvable:$true] %s45_s29 }
  0x26   :  { %p729_p3 = scmp.lt.u32.totalorder %s725_s9, %s868_s3 }
  0x28   :  { %p731_p4 = pnand %p729_p3, %p726_p2 }
  0x2a   :  { %734 = shalt.err (!%p731_p4)
}
  0x2b   :  { %s735_s16 = scalar_lea.vmem %s46_s29, 4096  ;;  %p740_p6 = scmp.lt.s32.totalorder %s46_s29, %s46_s29 }
  0x2c   :  { %p736_p5 = scmp.ne.s32.totalorder %s46_s29, %s735_s16  ;;  %p741_p7 = scmp.lt.s32.totalorder %s735_s16, %s735_s16 }
  0x2e   :  { %p742_p8 = por %p741_p7, %p740_p6 }
  0x30   :  { %p743_p9 = pnand %p742_p8, %p736_p5 }
  0x32   :  { %746 = shalt.err (!%p743_p9)
}
  0x33   :  { %51 = dma.hbm_to_vmem [thread:$0]  %s868_s3, 4096, %s46_s29, [#allocation5], %s753_s13, %s753_s13, %s754_s14  }
  0x34   :  { %747 = dma.done.wait [#allocation3], 256  }
  0x35   :  { %748 = vsyncadd [#allocation3], 4294967040 }
  0x36   :  { %749 = dma.done.wait [#allocation5], 4608  }
  0x37   :  { %750 = vsyncadd [#allocation5], 4294962688  ;;  %v756_v0 = vmov 0   ;;  %v619_v1 = vld [vmem:[#allocation4 + $0x4] ss:$8 sps:$4 sm:$0xff]   ;;  %v68_v5 = vld [vmem:[#allocation2] sm:$0xff]  ;;  %v77_v40 = vlaneseq }
  0x38   :  { %143 = vmatprep.mubr.bf16.mxu0 %v756_v0  ;;  %v621_v2 = vld [vmem:[#allocation4] ss:$8 sps:$4 sm:$0xff]   ;;  %111 = vmatprep.subr.bf16.mxu0 %v619_v1  ;;  %v622_v3 = vld [vmem:[#allocation4 + $0x14] ss:$8 sps:$4 sm:$0xff]   ;;  %v624_v4 = vld [vmem:[#allocation4 + $0x10] ss:$8 sps:$4 sm:$0xff]  }
  0x39   :  { %112 = vmatpush1.bf16.msra.mxu0 %v621_v2  ;;  %v69_v6 = vld [vmem:[#allocation2 + $0x8] sm:$0xff]  ;;  %v625_v7 = vld [vmem:[#allocation6 + $0x4] ss:$8 sps:$4 sm:$0xff]   ;;  %v627_v8 = vld [vmem:[#allocation6] ss:$8 sps:$4 sm:$0xff]   ;;  %vm107_vm0 = vcmask 261120  }
  0x3a   :  { %113 = vmatprep.subr.bf16.mxu0 %v622_v3  ;;  %v628_v9 = vld [vmem:[#allocation6 + $0x14] ss:$8 sps:$4 sm:$0xff]   ;;  %v70_v10 = vpack.c.bf16 %v69_v6, %v68_v5  ;;  %364 = vmatprep.subr.bf16.mxu1 %v625_v7  ;;  %v630_v11 = vld [vmem:[#allocation6 + $0x10] ss:$8 sps:$4 sm:$0xff]   ;;  %v631_v12 = vld [vmem:[#allocation6 + $0x24] ss:$8 sps:$4 sm:$0xff]  }
  0x3b   :  { %365 = vmatpush1.bf16.msra.mxu1 %v627_v8  ;;  %v633_v13 = vld [vmem:[#allocation6 + $0x20] ss:$8 sps:$4 sm:$0xff]   ;;  %v634_v14 = vld [vmem:[#allocation6 + $0x34] ss:$8 sps:$4 sm:$0xff]   ;;  %v636_v15 = vld [vmem:[#allocation6 + $0x30] ss:$8 sps:$4 sm:$0xff]  }
  0x3c   :  { %366 = vmatprep.subr.bf16.mxu1 %v628_v9  ;;  %v637_v16 = vld [vmem:[#allocation6 + $0x44] ss:$8 sps:$4 sm:$0xff]   ;;  %v639_v17 = vld [vmem:[#allocation6 + $0x40] ss:$8 sps:$4 sm:$0xff]   ;;  %v640_v18 = vld [vmem:[#allocation6 + $0x54] ss:$8 sps:$4 sm:$0xff]  }
  0x3d   :  { %114 = vmatpush1.bf16.msra.mxu0 %v624_v4  ;;  %v642_v19 = vld [vmem:[#allocation6 + $0x50] ss:$8 sps:$4 sm:$0xff]   ;;  %v643_v20 = vld [vmem:[#allocation6 + $0x64] ss:$8 sps:$4 sm:$0xff]   ;;  %v645_v21 = vld [vmem:[#allocation6 + $0x60] ss:$8 sps:$4 sm:$0xff]  }
  0x3e   :  { %v646_v22 = vld [vmem:[#allocation6 + $0x74] ss:$8 sps:$4 sm:$0xff]   ;;  %v648_v23 = vld [vmem:[#allocation6 + $0x70] ss:$8 sps:$4 sm:$0xff]   ;;  %v649_v24 = vld [vmem:[#allocation6 + $0x84] ss:$8 sps:$4 sm:$0xff]  }
  0x3f   :  { %367 = vmatpush1.bf16.msra.mxu1 %v630_v11  ;;  %v651_v25 = vld [vmem:[#allocation6 + $0x80] ss:$8 sps:$4 sm:$0xff]   ;;  %v652_v26 = vld [vmem:[#allocation6 + $0x94] ss:$8 sps:$4 sm:$0xff]   ;;  %v654_v27 = vld [vmem:[#allocation6 + $0x90] ss:$8 sps:$4 sm:$0xff]  }
  0x40   :  { %577 = vmatmul.mubr.msk.bf16.vlgmr.msra.gmra.mrb[0].mxu0 %vm107_vm0, %v70_v10  ;;  %368 = vmatprep.subr.bf16.mxu1 %v631_v12  ;;  %v655_v28 = vld [vmem:[#allocation6 + $0xa4] ss:$8 sps:$4 sm:$0xff]   ;;  %v657_v29 = vld [vmem:[#allocation6 + $0xa0] ss:$8 sps:$4 sm:$0xff]   ;;  %v658_v30 = vld [vmem:[#allocation6 + $0xb4] ss:$8 sps:$4 sm:$0xff]  }
  0x41   :  { %v660_v31 = vld [vmem:[#allocation6 + $0xb0] ss:$8 sps:$4 sm:$0xff]   ;;  %v661_v32 = vld [vmem:[#allocation6 + $0xc4] ss:$8 sps:$4 sm:$0xff]   ;;  %v663_v33 = vld [vmem:[#allocation6 + $0xc0] ss:$8 sps:$4 sm:$0xff]  }
  0x42   :  { %v664_v34 = vld [vmem:[#allocation6 + $0xd4] ss:$8 sps:$4 sm:$0xff]   ;;  %v666_v35 = vld [vmem:[#allocation6 + $0xd0] ss:$8 sps:$4 sm:$0xff]   ;;  %v667_v36 = vld [vmem:[#allocation6 + $0xe4] ss:$8 sps:$4 sm:$0xff]  }
  0x43   :  { %369 = vmatpush1.bf16.msra.mxu1 %v633_v13  ;;  %v669_v37 = vld [vmem:[#allocation6 + $0xe0] ss:$8 sps:$4 sm:$0xff]   ;;  %v670_v38 = vld [vmem:[#allocation6 + $0xf4] ss:$8 sps:$4 sm:$0xff]   ;;  %v672_v39 = vld [vmem:[#allocation6 + $0xf0] ss:$8 sps:$4 sm:$0xff]  }
  0x44   :  { %370 = vmatprep.subr.bf16.mxu1 %v634_v14  ;;  %v78_v41 = vshrl.u32 %v77_v40, 7  ;;  %v75_v43 = vld [vmem:[%s867_s2] sm:$0x3]  ;;  %vm522_vm1 = vcmask 7168   ;;  %vm525_vm2 = vcmask 15360   ;;  %vm528_vm3 = vcmask 23552  }
  0x45   :  { %v192_v61 = vld [vmem:[%s869_s4] sm:$0x3] }
  0x46   :  { %v79_v42 = vsub.s32 0, %v78_v41  ;;  %v83_v44 = vsub.s32 1, %v78_v41  ;;  %v482_v62 = vsub.s32 2, %v78_v41  ;;  %v411_v63 = vld [vmem:[%s870_s5] sm:$0x77]  ;;  %v486_v0 = vsub.s32 6, %v78_v41 }
  0x47   :  { %371 = vmatpush1.bf16.msra.mxu1 %v636_v15  ;;  %v420_v1 = vsub.s32 4, %v78_v41  ;;  %v456_v2 = vsub.s32 5, %v78_v41 }
  0x48   :  { %372 = vmatprep.subr.bf16.mxu1 %v637_v16  ;;  %v80_v45 = vrot.slane %v75_v43, %v79_v42  ;;  %v84_v46 = vrot.slane %v75_v43, %v83_v44  ;;  %v197_v3 = vrot.slane %v192_v61, %v79_v42  ;;  %v483_v4 = vrot.slane %v411_v63, %v482_v62 }
  0x49   :  { %v417_v5 = vrot.slane %v411_v63, %v79_v42  ;;  %v453_v6 = vrot.slane %v411_v63, %v83_v44  ;;  %v201_v7 = vrot.slane %v192_v61, %v83_v44  ;;  %v487_v8 = vrot.slane %v411_v63, %v486_v0 }
  0x4a   :  { %v421_v9 = vrot.slane %v411_v63, %v420_v1  ;;  %v457_v10 = vrot.slane %v411_v63, %v456_v2  ;;  %v493_v14 = vrot.slane %v483_v4, %v482_v62 }
  0x4b   :  { %373 = vmatpush1.bf16.msra.mxu1 %v639_v17  ;;  %v427_v15 = vrot.slane %v417_v5, %v79_v42  ;;  %v463_v16 = vrot.slane %v453_v6, %v83_v44 }
  0x4c   :  { %374 = vmatprep.subr.bf16.mxu1 %v640_v18 }
  0x4f   :  { %375 = vmatpush1.bf16.msra.mxu1 %v642_v19  ;;  %v497_v19 = vrot.slane %v487_v8, %v482_v62 }
  0x50   :  { %376 = vmatprep.subr.bf16.mxu1 %v643_v20  ;;  %v431_v20 = vrot.slane %v421_v9, %v79_v42 }
  0x53   :  { %377 = vmatpush1.bf16.msra.mxu1 %v645_v21  ;;  %v467_v21 = vrot.slane %v457_v10, %v83_v44 }
  0x54   :  { %378 = vmatprep.subr.bf16.mxu1 %v646_v22 }
  0x57   :  { %379 = vmatpush1.bf16.msra.mxu1 %v648_v23 }
  0x58   :  { %380 = vmatprep.subr.bf16.mxu1 %v649_v24 }
  0x5b   :  { %381 = vmatpush1.bf16.msra.mxu1 %v651_v25 }
  0x5c   :  { %382 = vmatprep.subr.bf16.mxu1 %v652_v26 }
  0x5f   :  { %383 = vmatpush1.bf16.msra.mxu1 %v654_v27 }
  0x60   :  { %384 = vmatprep.subr.bf16.mxu1 %v655_v28 }
  0x63   :  { %385 = vmatpush1.bf16.msra.mxu1 %v657_v29 }
  0x64   :  { %386 = vmatprep.subr.bf16.mxu1 %v658_v30 }
  0x67   :  { %387 = vmatpush1.bf16.msra.mxu1 %v660_v31 }
  0x68   :  { %388 = vmatprep.subr.bf16.mxu1 %v661_v32 }
  0x6b   :  { %389 = vmatpush1.bf16.msra.mxu1 %v663_v33 }
  0x6c   :  { %390 = vmatprep.subr.bf16.mxu1 %v664_v34 }
  0x6f   :  { %391 = vmatpush1.bf16.msra.mxu1 %v666_v35 }
  0x70   :  { %392 = vmatprep.subr.bf16.mxu1 %v667_v36 }
  0x73   :  { %393 = vmatpush1.bf16.msra.mxu1 %v669_v37 }
  0x74   :  { %394 = vmatprep.subr.bf16.mxu1 %v670_v38 }
  0x77   :  { %395 = vmatpush1.bf16.msra.mxu1 %v672_v39 }
 0x113   :  { %v145_v47 = vpop.f32.mrb[0].mxu0 }
 0x114   :  { %v146_v48 = vadd.f32 %v145_v47, %v80_v45  ;;  %v147_v49 = vpop.f32.mrb[1].mxu0  ;;  %v610_v47 = vld [vmem:[%s871_s6] ss:$0 sm:$0xff] }
 0x115   :  { %v148_v50 = vadd.f32 %v147_v49, %v84_v46  ;;  %v149_v51 = vpop.f32.mrb[2].mxu0 }
 0x116   :  { %v150_v52 = vadd.f32 %v149_v51, %v80_v45  ;;  %v151_v53 = vpop.f32.mrb[3].mxu0  ;;  %v154_v55 = vmax.f32 %v146_v48, 0.0 }
 0x117   :  { %v152_v54 = vadd.f32 %v151_v53, %v84_v46  ;;  %v155_v57 = vmax.f32 %v148_v50, 0.0 }
 0x118   :  { %v156_v56 = vmax.f32 %v150_v52, 0.0 }
 0x119   :  { %v157_v58 = vmax.f32 %v152_v54, 0.0 }
 0x11a   :  { %v158_v59 = vpack.c.bf16 %v156_v56, %v154_v55 }
 0x11b   :  { %v159_v60 = vpack.c.bf16 %v157_v58, %v155_v57 }
 0x11d   :  { %396 = vmatprep.mubr.bf16.mxu1 %v159_v60 }
 0x11e   :  { %397 = vmatmul.mubr.bf16.vlgmr.msra.gmra.mrb[0].mxu1 %v158_v59 }
 0x1f1   :  { %v398_v11 = vpop.f32.mrb[0].mxu1 }
 0x1f2   :  { %v399_v12 = vadd.f32 %v398_v11, %v197_v3  ;;  %v400_v13 = vpop.f32.mrb[1].mxu1 }
 0x1f3   :  { %v401_v17 = vadd.f32 %v400_v13, %v201_v7  ;;  %v402_v18 = vpop.f32.mrb[2].mxu1 }
 0x1f4   :  { %v407_v22 = vmax.f32 %v399_v12, 0.0  ;;  %v403_v23 = vadd.f32 %v402_v18, %v197_v3  ;;  %v404_v24 = vpop.f32.mrb[3].mxu1 }
 0x1f5   :  { %v408_v25 = vmax.f32 %v401_v17, 0.0  ;;  %v405_v26 = vadd.f32 %v404_v24, %v201_v7 }
 0x1f6   :  { %v409_v27 = vmax.f32 %v403_v23, 0.0  ;;  %v498_v28 = vmul.f32 %v493_v14, %v407_v22  ;;  %v432_v29 = vmul.f32 %v427_v15, %v407_v22  ;;  %v468_v30 = vmul.f32 %v463_v16, %v407_v22 }
 0x1f7   :  { %v410_v31 = vmax.f32 %v405_v26, 0.0  ;;  %v499_v32 = vmul.f32 %v497_v19, %v408_v25  ;;  %v433_v33 = vmul.f32 %v431_v20, %v408_v25  ;;  %v469_v34 = vmul.f32 %v467_v21, %v408_v25 }
 0x1f8   :  { %v500_v35 = vmul.f32 %v493_v14, %v409_v27  ;;  %v434_v36 = vmul.f32 %v427_v15, %v409_v27  ;;  %v470_v37 = vmul.f32 %v463_v16, %v409_v27 }
 0x1f9   :  { %v502_v38 = vadd.f32 %v499_v32, %v498_v28  ;;  %v436_v39 = vadd.f32 %v433_v33, %v432_v29  ;;  %v501_v40 = vmul.f32 %v497_v19, %v410_v31  ;;  %v472_v41 = vadd.f32 %v469_v34, %v468_v30 }
 0x1fa   :  { %v435_v42 = vmul.f32 %v431_v20, %v410_v31  ;;  %v471_v43 = vmul.f32 %v467_v21, %v410_v31 }
 0x1fb   :  { %503 = vadd.xlane.f32.xlu0 %v502_v38  ;;  %437 = vadd.xlane.f32.xlu1 %v436_v39  ;;  %v505_v44 = vadd.f32 %v501_v40, %v500_v35 }
 0x1fc   :  { %v439_v45 = vadd.f32 %v435_v42, %v434_v36  ;;  %v475_v46 = vadd.f32 %v471_v43, %v470_v37 }
 0x1ff   :  { %506 = vadd.xlane.f32.xlu0 %v505_v44  ;;  %473 = vadd.xlane.f32.xlu1 %v472_v41 }
 0x203   :  { %440 = vadd.xlane.f32.xlu0 %v439_v45  ;;  %476 = vadd.xlane.f32.xlu1 %v475_v46 }
 0x288   :  { %v504_v48 = vpop.xlane.xlu0 %503  ;;  %v438_v54 = vpop.xlane.xlu1 %437 }
 0x289   :  { %v508_v49 = vadd.f32 %v610_v47, %v504_v48  ;;  %v448_v63 = vadd.f32 %v610_v47, %v438_v54 }
 0x28b   :  { %v611_v50 = vmul.f32 -1.442695, %v508_v49 }
 0x28c   :  { %v507_v51 = vpop.xlane.xlu0 %506  ;;  %v474_v58 = vpop.xlane.xlu1 %473 }
 0x28d   :  { %673 = vpow2.f32 %v611_v50  ;;  %v509_v52 = vadd.f32 %v610_v47, %v507_v51  ;;  %v478_v60 = vadd.f32 %v610_v47, %v474_v58 }
 0x28f   :  { %v612_v53 = vmul.f32 -1.442695, %v509_v52  ;;  %v523_v1 = vsel %vm522_vm1, %v448_v63, %v478_v60 }
 0x290   :  { %v441_v61 = vpop.xlane.xlu0 %440  ;;  %v477_v62 = vpop.xlane.xlu1 %476 }
 0x291   :  { %675 = vpow2.f32 %v612_v53 }
 0x297   :  { %v674_v55 = vpop.eup %673 }
 0x298   :  { %v516_v56 = vadd.f32 1.0, %v674_v55 }
 0x29a   :  { %677 = vrcp.f32 %v516_v56 }
 0x29b   :  { %v676_v57 = vpop.eup %675 }
 0x29c   :  { %v517_v59 = vadd.f32 1.0, %v676_v57 }
 0x29e   :  { %679 = vrcp.f32 %v517_v59 }
 0x2a4   :  { %v678_v0 = vpop.eup %677 }
 0x2a5   :  { %v526_v2 = vsel %vm525_vm2, %v523_v1, %v678_v0 }
 0x2a6   :  { %529 = vst.msk [vmem:[#allocation7] sm:$0xff] %vm528_vm3, %v526_v2 }
 0x2a8   :  { %v680_v3 = vpop.eup %679 }
 0x2ad   :  { %v560_v4 = vld [vmem:[#allocation7] sm:$0xff] }
 0x2ae   :  { %561 = vst [vmem:[%s872_s7] sm:$0xff] %v560_v4 }
 0x2af   :  { %567 = vsyncpa [#allocation3], 1 }
 0x2b0   :  { %568 = vsyncpa [#allocation5], 1 }

</bundles_post_ra>
